<compile_context>
chip_gen: v7x
topology: tpu7x:2x2x1
jax: 0.10.0
libtpu: 0.0.40
codegen_flags: <defaults>
</compile_context>

<pallas_src>
import jax
import jax.numpy as jnp
from jax.experimental import pallas as pl
from jax.experimental.pallas import tpu as pltpu

_LANE = 512            # lane-dense last dim (multiple of 128)
_MAX_TILE_ROWS = 1024  # 1024 x 512 x 4B = 2 MiB per block
                       # => 2 bufs x (in + out) = 8 MiB VMEM, safe on v5e/v6e/v7x


def _round_up(a, m):
    return ((a + m - 1) // m) * m


def _view_learner_kernel(w_ref, b_ref, x_ref, o_ref):
    # w_ref, b_ref: (1,) f32 in SMEM (scalar conv weight / bias)
    # x_ref, o_ref: (tile_rows, _LANE) VMEM tiles
    w = w_ref[0]
    b = b_ref[0]
    o_ref[...] = jnp.maximum(x_ref[...] * w + b, 0.0)


def view_learner_forward(x_nchw, weight, bias):
    """Forward pass of view_learner: relu(conv1x1(x)) with 1 in/out channel.

    Args:
      x_nchw: (N, 1, H, W) float32 input (PyTorch NCHW convention, C=1).
      weight: conv weight of shape (1, 1, 1, 1) (scalar 1x1 conv).
      bias:   conv bias of shape (1,).

    Returns:
      (N, 1, H, W) float32 output.
    """
    n, c, h, w = x_nchw.shape
    assert c == 1, "view_learner uses a single input channel"

    x = x_nchw.astype(jnp.float32)
    w_scalar = weight.reshape(1).astype(jnp.float32)
    b_scalar = bias.reshape(1).astype(jnp.float32)

    total = n * c * h * w

    # Flatten to a lane-dense 2D slab (rows, _LANE), padding as needed so
    # (tile_rows, _LANE) blocks tile it exactly (padding is cropped below).
    rows = pl.cdiv(total, _LANE)
    tile_rows = min(_MAX_TILE_ROWS, _round_up(rows, 8))
    rows_padded = _round_up(rows, tile_rows)
    padded_total = rows_padded * _LANE

    x_flat = x.reshape(total)
    if padded_total != total:
        x_flat = jnp.pad(x_flat, (0, padded_total - total))
    x2d = x_flat.reshape(rows_padded, _LANE)

    grid = rows_padded // tile_rows

    out2d = pl.pallas_call(
        _view_learner_kernel,
        out_shape=jax.ShapeDtypeStruct((rows_padded, _LANE), jnp.float32),
        grid_spec=pltpu.PrefetchScalarGridSpec(
            num_scalar_prefetch=0,
            grid=(grid,),
            in_specs=[
                pl.BlockSpec(memory_space=pltpu.MemorySpace.SMEM),   # weight
                pl.BlockSpec(memory_space=pltpu.MemorySpace.SMEM),   # bias
                pl.BlockSpec((tile_rows, _LANE), lambda i: (i, 0)),  # x
            ],
            out_specs=pl.BlockSpec((tile_rows, _LANE), lambda i: (i, 0)),
        ),
        compiler_params=pltpu.CompilerParams(
            dimension_semantics=("parallel",),
        ),
        cost_estimate=pl.CostEstimate(
            flops=2 * total,
            transcendentals=0,
            bytes_accessed=2 * total * 4,
        ),
    )(w_scalar, b_scalar, x2d)

    out = out2d.reshape(padded_total)[:total].reshape(n, c, h, w)
    return out


if __name__ == "__main__":
    key = jax.random.PRNGKey(0)
    k_x, k_w, k_b = jax.random.split(key, 3)

    # Small shapes consistent with the module: NCHW with C=1.
    N, C, H, W = 2, 1, 16, 16
    x = jax.random.normal(k_x, (N, C, H, W), dtype=jnp.float32)

    # Conv2d(1, 1, kernel_size=1): weight (1,1,1,1), bias (1,)
    weight = jax.random.normal(k_w, (1, 1, 1, 1), dtype=jnp.float32)
    bias = jax.random.normal(k_b, (1,), dtype=jnp.float32)

    out = view_learner_forward(x, weight, bias)
    out = jax.block_until_ready(out)

    # Sanity check against plain-JAX reference of the same math.
    ref = jnp.maximum(x * weight.reshape(()) + bias.reshape(()), 0.0)
    assert out.shape == (N, C, H, W)
    assert jnp.allclose(out, ref, atol=1e-6, rtol=1e-6)

    print("KERNEL_OK")
</pallas_src>

<mosaic_0001>
module attributes {stable_mosaic.version = 11 : i64} {
  func.func @_view_learner_kernel(%arg0: i32, %arg1: memref<1xf32, #tpu.memory_space<smem>>, %arg2: memref<1xf32, #tpu.memory_space<smem>>, %arg3: memref<8x512xf32, #tpu.memory_space<vmem>>, %arg4: memref<8x512xf32, #tpu.memory_space<vmem>>) attributes {dimension_semantics = [#tpu.dimension_semantics<parallel>], iteration_bounds = array<i64: 1>, scalar_prefetch = 0 : i64, scratch_operands = 0 : i64, tpu.core_type = #tpu.core_type<tc>, window_params = [{transform_indices = @transform_0, window_bounds = array<i64: 1>}, {transform_indices = @transform_1, window_bounds = array<i64: 1>}, {transform_indices = @transform_2, window_bounds = array<i64: 8, 512>}, {transform_indices = @transform_3, window_bounds = array<i64: 8, 512>}]} {
    %c0 = arith.constant 0 : index
    %0 = memref.load %arg1[%c0] : memref<1xf32, #tpu.memory_space<smem>>
    %c0_0 = arith.constant 0 : index
    %1 = memref.load %arg2[%c0_0] : memref<1xf32, #tpu.memory_space<smem>>
    %c0_1 = arith.constant 0 : index
    %c0_2 = arith.constant 0 : index
    %2 = vector.load %arg3[%c0_1, %c0_2] : memref<8x512xf32, #tpu.memory_space<vmem>>, vector<8x512xf32>
    %3 = vector.broadcast %0 : f32 to vector<8x512xf32>
    %4 = arith.mulf %2, %3 : vector<8x512xf32>
    %5 = vector.broadcast %1 : f32 to vector<8x512xf32>
    %6 = arith.addf %4, %5 : vector<8x512xf32>
    %cst = arith.constant 0.000000e+00 : f32
    %7 = vector.broadcast %cst : f32 to vector<8x512xf32>
    %8 = arith.maximumf %6, %7 : vector<8x512xf32>
    %c0_3 = arith.constant 0 : index
    %c0_4 = arith.constant 0 : index
    %9 = vector.load %arg4[%c0_3, %c0_4] : memref<8x512xf32, #tpu.memory_space<vmem>>, vector<8x512xf32>
    tpu.vector_store %arg4[%c0_3, %c0_4], %8 {strides = array<i32>} : memref<8x512xf32, #tpu.memory_space<vmem>>, vector<8x512xf32>,
    return
  }
  func.func @transform_0(%arg0: i32) -> i32 {
    %c0_i32 = arith.constant 0 : i32
    %c0_i32_0 = arith.constant 0 : i32
    return %c0_i32 : i32
  }
  func.func @transform_1(%arg0: i32) -> i32 {
    %c0_i32 = arith.constant 0 : i32
    %c0_i32_0 = arith.constant 0 : i32
    return %c0_i32 : i32
  }
  func.func @transform_2(%arg0: i32) -> (i32, i32) {
    %c0_i32 = arith.constant 0 : i32
    %c0_i32_0 = arith.constant 0 : i32
    return %arg0, %c0_i32 : i32, i32
  }
  func.func @transform_3(%arg0: i32) -> (i32, i32) {
    %c0_i32 = arith.constant 0 : i32
    %c0_i32_0 = arith.constant 0 : i32
    return %arg0, %c0_i32 : i32, i32
  }
}

</mosaic_0001>

<bundles_post_ra>
// kernel: tpu_custom_call.1
= control target key start
LH: loop header
LB: loop body
LE: loop exit
PB: predicated region body
PF: predicated region fallthrough
CT: control target
= control target key end

     0   :  { %10 = vsyncpa [#allocation5], 0  ;;  %s170_s0 = inlined_call_operand.<no memory space> [shape: f32[1], index: 0, kind: input, shape index: {}]   ;;  %s171_s1 = inlined_call_operand.<no memory space> [shape: f32[1], index: 1, kind: input, shape index: {}]   ;;  %s172_s2 = inlined_call_operand.hbm [shape: f32[8,512], index: 2, kind: input, shape index: {}]   ;;  %s173_s3 = inlined_call_operand.hbm [shape: f32[8,512], index: 3, kind: output, shape index: {}]  }
   0x1   :  { %11 = vsyncpa [#allocation6], 0  ;;  %s118_s12 = smov [#allocation4]   ;;  %s70_s16 = scalar_lea.hbm %s172_s2, 512 }
   0x2   :  { %s22_s13 = sshll.u32 %s118_s12, 4  ;;  %p71_p0 = scmp.ne.s32.totalorder %s172_s2, %s70_s16  ;;  %s23_s13 = int_to_ptr.vmem [resolvable:$true] %s22_s13 }
   0x3   :  { %p74_p1 = scmp.lt.u32.totalorder %s70_s16, %s172_s2 }
   0x5   :  { %p76_p2 = pnand %p74_p1, %p71_p0 }
   0x7   :  { %79 = shalt.err (!%p76_p2)
}
   0x8   :  { %s80_s21 = scalar_lea.vmem %s23_s13, 512  ;;  %p85_p4 = scmp.lt.s32.totalorder %s23_s13, %s23_s13 }
   0x9   :  { %p81_p3 = scmp.ne.s32.totalorder %s23_s13, %s80_s21  ;;  %p86_p5 = scmp.lt.s32.totalorder %s80_s21, %s80_s21 }
   0xb   :  { %p87_p6 = por %p86_p5, %p85_p4 }
   0xd   :  { %p88_p7 = pnand %p87_p6, %p81_p3 }
   0xf   :  { %91 = shalt.err (!%p88_p7)
}
  0x10   :  { %25 = dma.hbm_to_vmem [thread:$0]  %s172_s2, 512, %s23_s13, [#allocation5]  }
  0x11   :  { %114 = dma.done.wait [#allocation5], 512  }
  0x12   :  { %115 = vsyncadd [#allocation5], 4294966784  ;;  %v35_v0 = vstv %s170_s0  ;;  %v31_v1 = vld [vmem:[#allocation4] sm:$0xff]  ;;  %v40_v2 = vstv %s171_s1  ;;  %v32_v3 = vld [vmem:[#allocation4 + $0x8] sm:$0xff]  ;;  %s119_s2 = smov [#allocation7]  }
  0x13   :  { %v33_v4 = vld [vmem:[#allocation4 + $0x10] sm:$0xff]  ;;  %v36_v5 = vmul.f32 %v35_v0, %v31_v1  ;;  %v37_v6 = vmul.f32 %v35_v0, %v32_v3  ;;  %v34_v8 = vld [vmem:[#allocation4 + $0x18] sm:$0xff]  ;;  %s59_s28 = sshll.u32 %s119_s2, 4  ;;  %s60_s28 = int_to_ptr.vmem [resolvable:$true] %s59_s28 }
  0x14   :  { %v38_v7 = vmul.f32 %v35_v0, %v33_v4  ;;  %v39_v9 = vmul.f32 %v35_v0, %v34_v8  ;;  %s92_s0 = scalar_lea.vmem %s60_s28, 512  ;;  %p97_p9 = scmp.lt.s32.totalorder %s60_s28, %s60_s28 }
  0x15   :  { %v41_v10 = vadd.f32 %v40_v2, %v36_v5  ;;  %v42_v11 = vadd.f32 %v40_v2, %v37_v6  ;;  %p93_p8 = scmp.ne.s32.totalorder %s60_s28, %s92_s0  ;;  %p98_p10 = scmp.lt.s32.totalorder %s92_s0, %s92_s0 }
  0x16   :  { %v43_v12 = vadd.f32 %v40_v2, %v38_v7  ;;  %v44_v13 = vadd.f32 %v40_v2, %v39_v9 }
  0x17   :  { %v45_v14 = vmax.f32 %v41_v10, 0.0  ;;  %v46_v15 = vmax.f32 %v42_v11, 0.0  ;;  %p99_p11 = por %p98_p10, %p97_p9 }
  0x18   :  { %v47_v16 = vmax.f32 %v43_v12, 0.0  ;;  %v48_v17 = vmax.f32 %v44_v13, 0.0 }
  0x19   :  { %49 = vst [vmem:[#allocation7] sm:$0xff] %v45_v14  ;;  %50 = vst [vmem:[#allocation7 + $0x8] sm:$0xff] %v46_v15  ;;  %p100_p12 = pnand %p99_p11, %p93_p8 }
  0x1a   :  { %51 = vst [vmem:[#allocation7 + $0x10] sm:$0xff] %v47_v16  ;;  %52 = vst [vmem:[#allocation7 + $0x18] sm:$0xff] %v48_v17 }
  0x1b   :  { %103 = shalt.err (!%p100_p12)
}
  0x1c   :  { %s104_s30 = scalar_lea.hbm %s173_s3, 512 }
  0x1d   :  { %p105_p13 = scmp.ne.s32.totalorder %s173_s3, %s104_s30  ;;  %p108_p0 = scmp.lt.u32.totalorder %s104_s30, %s173_s3 }
  0x1f   :  { %p110_p1 = pnand %p108_p0, %p105_p13 }
  0x21   :  { %113 = shalt.err (!%p110_p1)
}
  0x22   :  { %62 = dma.vmem_to_hbm [thread:$0]  %s60_s28, 512, %s173_s3, [#allocation6]  }
  0x23   :  { %116 = dma.done.wait [#allocation6], 512  }
  0x24   :  { %117 = vsyncadd [#allocation6], 4294966784 }
  0x25   :  { %66 = vsyncpa [#allocation5], 1 }
  0x26   :  { %67 = vsyncpa [#allocation6], 1 }

</bundles_post_ra>
